<compile_context>
chip_gen: v5e
topology: v5e:2x2
jax: 0.10.0
libtpu: 0.0.40
codegen_flags: <defaults>
</compile_context>

<pallas_src>
import jax
import jax.numpy as jnp
from jax.experimental import pallas as pl
from jax.experimental.pallas import tpu as pltpu

_LANES = 128
_SUBLANES = 8


def _affine_kernel(w_ref, b_ref, x_ref, o_ref):
    # w_ref / b_ref are (1,) f32 scalars in SMEM; x_ref / o_ref are VMEM tiles.
    w = w_ref[0].astype(x_ref.dtype)
    b = b_ref[0].astype(x_ref.dtype)
    o_ref[...] = x_ref[...] * w + b


def _pick_tile_rows(rows: int) -> int:
    """Pick the largest lane-dense row tile that divides `rows`.

    Small inputs (<= 1024 rows = 512 KiB f32) become a single block (grid of 1).
    Large inputs get <= 1024-row tiles so (in + out) * double-buffering stays
    ~<= 2 MiB, comfortably inside the scoped-VMEM default on v5e/v6e/v7x while
    still reaching ~85%+ of the HBM roofline.
    """
    if rows <= 1024:
        return rows
    for t in (1024, 512, 256, 128, 64, 32, 16, 8):
        if rows % t == 0:
            return t
    return 8  # rows is always padded to a multiple of 8 when needed


def neural_net_forward(x: jax.Array, weight: jax.Array, bias: jax.Array) -> jax.Array:
    """y = weight * x + bias, with weight/bias of shape (1,), like the torch module."""
    orig_shape = x.shape
    n = x.size
    chunk = _LANES * _SUBLANES

    x_flat = x.reshape(-1)
    padded = (n % chunk) != 0
    if padded:
        # Ragged tail fallback only; the fast path (multiple of 8*128) skips this.
        n_pad = ((n + chunk - 1) // chunk) * chunk
        x_flat = jnp.pad(x_flat, (0, n_pad - n))
    else:
        n_pad = n

    rows = n_pad // _LANES
    x2d = x_flat.reshape(rows, _LANES)

    tile_rows = _pick_tile_rows(rows)
    grid = (rows // tile_rows,)

    w_smem = weight.reshape(1).astype(jnp.float32)
    b_smem = bias.reshape(1).astype(jnp.float32)

    out2d = pl.pallas_call(
        _affine_kernel,
        out_shape=jax.ShapeDtypeStruct((rows, _LANES), x.dtype),
        grid=grid,
        in_specs=[
            pl.BlockSpec(memory_space=pltpu.SMEM),                 # weight scalar
            pl.BlockSpec(memory_space=pltpu.SMEM),                 # bias scalar
            pl.BlockSpec((tile_rows, _LANES), lambda i: (i, 0)),   # x tile
        ],
        out_specs=pl.BlockSpec((tile_rows, _LANES), lambda i: (i, 0)),
        # Elementwise affine can run in place: x tile (input idx 2) -> output 0.
        input_output_aliases={2: 0},
        compiler_params=pltpu.CompilerParams(
            # "parallel" lets v7x shard the row axis across its 2 TensorCores
            # on large inputs; no-op on v5e/v6e.
            dimension_semantics=("parallel",),
        ),
    )(w_smem, b_smem, x2d)

    out_flat = out2d.reshape(-1)
    if padded:
        out_flat = out_flat[:n]
    return out_flat.reshape(orig_shape)


if __name__ == "__main__":
    key = jax.random.PRNGKey(0)
    k_x, k_w, k_b = jax.random.split(key, 3)

    # Deterministic "parameters" (torch.rand(1) equivalents).
    weight = jax.random.uniform(k_w, (1,), dtype=jnp.float32)
    bias = jax.random.uniform(k_b, (1,), dtype=jnp.float32)

    # Small NCHW-like input; 2*4*16*16 = 2048 elements = a (16, 128) slab.
    x = jax.random.normal(k_x, (2, 4, 16, 16), dtype=jnp.float32)

    y = neural_net_forward(x, weight, bias)
    jax.block_until_ready(y)

    # Reference check in plain JAX.
    y_ref = weight[0] * x + bias[0]
    assert y.shape == x.shape
    assert jnp.allclose(y, y_ref, atol=1e-6, rtol=1e-6)

    print("KERNEL_OK")
</pallas_src>

<mosaic_0001>
module attributes {stable_mosaic.version = 11 : i64} {
  func.func @_affine_kernel(%arg0: i32, %arg1: memref<1xf32, #tpu.memory_space<smem>>, %arg2: memref<1xf32, #tpu.memory_space<smem>>, %arg3: memref<16x128xf32, #tpu.memory_space<vmem>>, %arg4: memref<16x128xf32, #tpu.memory_space<vmem>>) attributes {dimension_semantics = [#tpu.dimension_semantics<parallel>], iteration_bounds = array<i64: 1>, scalar_prefetch = 0 : i64, scratch_operands = 0 : i64, tpu.core_type = #tpu.core_type<tc>, window_params = [{transform_indices = @transform_0, window_bounds = array<i64: 1>}, {transform_indices = @transform_1, window_bounds = array<i64: 1>}, {transform_indices = @transform_2, window_bounds = array<i64: 16, 128>}, {transform_indices = @transform_3, window_bounds = array<i64: 16, 128>}]} {
    %c0 = arith.constant 0 : index
    %0 = memref.load %arg1[%c0] : memref<1xf32, #tpu.memory_space<smem>>
    %c0_0 = arith.constant 0 : index
    %1 = memref.load %arg2[%c0_0] : memref<1xf32, #tpu.memory_space<smem>>
    %c0_1 = arith.constant 0 : index
    %c0_2 = arith.constant 0 : index
    %2 = vector.load %arg3[%c0_1, %c0_2] : memref<16x128xf32, #tpu.memory_space<vmem>>, vector<16x128xf32>
    %3 = vector.broadcast %0 : f32 to vector<16x128xf32>
    %4 = arith.mulf %2, %3 : vector<16x128xf32>
    %5 = vector.broadcast %1 : f32 to vector<16x128xf32>
    %6 = arith.addf %4, %5 : vector<16x128xf32>
    %c0_3 = arith.constant 0 : index
    %c0_4 = arith.constant 0 : index
    %7 = vector.load %arg4[%c0_3, %c0_4] : memref<16x128xf32, #tpu.memory_space<vmem>>, vector<16x128xf32>
    tpu.vector_store %arg4[%c0_3, %c0_4], %6 {strides = array<i32>} : memref<16x128xf32, #tpu.memory_space<vmem>>, vector<16x128xf32>,
    return
  }
  func.func @transform_0(%arg0: i32) -> i32 {
    %c0_i32 = arith.constant 0 : i32
    %c0_i32_0 = arith.constant 0 : i32
    return %c0_i32 : i32
  }
  func.func @transform_1(%arg0: i32) -> i32 {
    %c0_i32 = arith.constant 0 : i32
    %c0_i32_0 = arith.constant 0 : i32
    return %c0_i32 : i32
  }
  func.func @transform_2(%arg0: i32) -> (i32, i32) {
    %c0_i32 = arith.constant 0 : i32
    %c0_i32_0 = arith.constant 0 : i32
    return %arg0, %c0_i32 : i32, i32
  }
  func.func @transform_3(%arg0: i32) -> (i32, i32) {
    %c0_i32 = arith.constant 0 : i32
    %c0_i32_0 = arith.constant 0 : i32
    return %arg0, %c0_i32 : i32, i32
  }
}

</mosaic_0001>

<bundles_post_ra>
// kernel: tpu_custom_call.1
= control target key start
LH: loop header
LB: loop body
LE: loop exit
PB: predicated region body
PF: predicated region fallthrough
CT: control target
= control target key end

     0   :  { %10 = vsyncpa [#allocation5], 0  ;;  %s156_s0 = inlined_call_operand.<no memory space> [shape: f32[1], index: 0, kind: input, shape index: {}]   ;;  %s157_s1 = inlined_call_operand.<no memory space> [shape: f32[1], index: 1, kind: input, shape index: {}]   ;;  %s158_s2 = inlined_call_operand.hbm [shape: f32[16,128], index: 2, kind: input, shape index: {}, may-alias: {2,3}]   ;;  %s159_s3 = inlined_call_operand.hbm [shape: f32[16,128], index: 3, kind: output, shape index: {}, may-alias: {2,3}]  }
   0x1   :  { %11 = vsyncpa [#allocation6], 0  ;;  %s20_s14 = sshll.u32 %s158_s2, 4  ;;  %s120_s15 = smov [#allocation4]   ;;  %s21_s14 = int_to_ptr.hbm [resolvable:$true] %s20_s14 }
   0x2   :  { %s22_s16 = sshll.u32 %s120_s15, 4  ;;  %s121_s17 = smov 128   ;;  %s23_s16 = int_to_ptr.vmem [resolvable:$true] %s22_s16 }
   0x3   :  { %s122_s18 = smov 8  }
   0x4   :  { %28 = dma.hbm_to_vmem [thread:$0]  %s21_s14, 256, %s23_s16, [#allocation5], %s121_s17, %s121_s17, %s122_s18  }
   0x5   :  { %116 = dma.done.wait [#allocation5], 256  }
   0x6   :  { %117 = vsyncadd [#allocation5], 4294967040  ;;  %v37_v0 = vstv %s156_s0  ;;  %v35_v1 = vld [vmem:[#allocation4] sm:$0xff]  ;;  %v40_v2 = vstv %s157_s1  ;;  %v36_v3 = vld [vmem:[#allocation4 + $0x8] sm:$0xff]  ;;  %s123_s2 = smov [#allocation7]   ;;  %s51_s26 = sshll.u32 %s159_s3, 4  ;;  %s52_s26 = int_to_ptr.hbm [resolvable:$true] %s51_s26 }
   0x7   :  { %v38_v4 = vmul.f32 %v37_v0, %v35_v1  ;;  %v39_v5 = vmul.f32 %v37_v0, %v36_v3  ;;  %s49_s23 = sshll.u32 %s123_s2, 4  ;;  %s50_s23 = int_to_ptr.vmem [resolvable:$true] %s49_s23 }
   0x9   :  { %v41_v6 = vadd.f32 %v40_v2, %v38_v4  ;;  %v42_v7 = vadd.f32 %v40_v2, %v39_v5 }
   0xb   :  { %43 = vst [vmem:[#allocation7] sm:$0xff] %v41_v6 }
   0xc   :  { %44 = vst [vmem:[#allocation7 + $0x8] sm:$0xff] %v42_v7 }
   0xd   :  { %57 = dma.vmem_to_hbm [thread:$0]  %s50_s23, 256, %s52_s26, [#allocation6], %s121_s17, %s121_s17, %s122_s18  }
   0xe   :  { %118 = dma.done.wait [#allocation6], 256  }
   0xf   :  { %119 = vsyncadd [#allocation6], 4294967040 }
  0x10   :  { %62 = vsyncpa [#allocation5], 1 }
  0x11   :  { %63 = vsyncpa [#allocation6], 1 }

</bundles_post_ra>
